<compile_context>
chip_gen: v7x
topology: tpu7x:2x2x1
jax: 0.10.0
libtpu: 0.0.40
codegen_flags: <defaults>
</compile_context>

<pallas_src>
import jax
import jax.numpy as jnp
from jax.experimental import pallas as pl
from jax.experimental.pallas import tpu as pltpu


def _cosine_sim_kernel(x1_ref, x2_ref, inv_r_ref, inv_c_ref, o_ref, acc_ref):
    k = pl.program_id(2)

    @pl.when(k == 0)
    def _init():
        acc_ref[...] = jnp.zeros_like(acc_ref)

    # MXU matmul in native operand dtype, f32 accumulation.
    acc_ref[...] += jnp.dot(
        x1_ref[...], x2_ref[...], preferred_element_type=jnp.float32
    )

    @pl.when(k == pl.num_programs(2) - 1)
    def _finalize():
        # epilogue: two cheap broadcast multiplies, no (tm, tn) denom temp.
        out = acc_ref[...] * inv_r_ref[...] * inv_c_ref[...]
        o_ref[...] = out.astype(o_ref.dtype)


def cosine_similarity(x1, x2, *, tm=256, tn=256, tk=512, out_dtype=None,
                      eps=1e-30):
    """Pallas TPU implementation of the CosineSimilarity module forward."""
    M, K = x1.shape
    K2, N = x2.shape
    assert K == K2, "inner dims must match"
    out_dtype = x1.dtype if out_dtype is None else out_dtype

    # Clamp tiles to the problem size (full-extent blocks are always legal).
    tm = min(tm, M)
    tn = min(tn, N)
    tk = min(tk, K)
    assert M % tm == 0 and N % tn == 0 and K % tk == 0, (
        f"dims ({M},{K},{N}) must be divisible by tiles ({tm},{tk},{tn})")

    # Hoisted inverse norms: tiny O(MK + KN) reductions, computed once in f32.
    # (eps only guards exactly-zero rows/cols; the reference module has none.)
    inv_r = jax.lax.rsqrt(jnp.maximum(
        jnp.sum(x1.astype(jnp.float32) ** 2, axis=1, keepdims=True), eps))   # (M, 1)
    inv_c = jax.lax.rsqrt(jnp.maximum(
        jnp.sum(x2.astype(jnp.float32) ** 2, axis=0, keepdims=True), eps))   # (1, N)

    grid = (M // tm, N // tn, K // tk)

    bytes_accessed = (
        x1.size * x1.dtype.itemsize
        + x2.size * x2.dtype.itemsize
        + inv_r.size * 4 + inv_c.size * 4
        + M * N * jnp.dtype(out_dtype).itemsize
    )
    cost = pl.CostEstimate(
        flops=2 * M * N * K, transcendentals=0, bytes_accessed=bytes_accessed)

    return pl.pallas_call(
        _cosine_sim_kernel,
        out_shape=jax.ShapeDtypeStruct((M, N), out_dtype),
        grid_spec=pltpu.PrefetchScalarGridSpec(
            num_scalar_prefetch=0,
            grid=grid,
            in_specs=[
                pl.BlockSpec((tm, tk), lambda i, j, k: (i, k)),   # x1 tile
                pl.BlockSpec((tk, tn), lambda i, j, k: (k, j)),   # x2 tile
                pl.BlockSpec((tm, 1), lambda i, j, k: (i, 0)),    # 1/row_norm
                pl.BlockSpec((1, tn), lambda i, j, k: (0, j)),    # 1/col_norm
            ],
            out_specs=pl.BlockSpec((tm, tn), lambda i, j, k: (i, j)),
            scratch_shapes=[pltpu.VMEM((tm, tn), jnp.float32)],
        ),
        compiler_params=pltpu.CompilerParams(
            dimension_semantics=("parallel", "parallel", "arbitrary")),
        cost_estimate=cost,
    )(x1, x2, inv_r, inv_c)


def _reference(x1, x2):
    x = x1 @ x2
    denom = (jnp.linalg.norm(x1, axis=1, keepdims=True)
             * jnp.linalg.norm(x2, axis=0, keepdims=True))
    return x / denom


if __name__ == "__main__":
    key = jax.random.PRNGKey(0)
    k1, k2 = jax.random.split(key)

    # Tiled case: grid (2, 2, 2), exercises the K-accumulator and M/N tiling.
    M, K, N = 256, 256, 512
    x1 = jax.random.normal(k1, (M, K), dtype=jnp.float32)
    x2 = jax.random.normal(k2, (K, N), dtype=jnp.float32)

    out = jax.block_until_ready(cosine_similarity(x1, x2, tm=128, tn=256, tk=128))
    ref = _reference(x1, x2)
    assert out.shape == (M, N)
    assert jnp.allclose(out, ref, atol=1e-2, rtol=1e-2), "f32 tiled mismatch"

    # Small-shape case (full-array blocks, grid (1, 1, 1)).
    x1s = jax.random.normal(k1, (8, 32), dtype=jnp.float32)
    x2s = jax.random.normal(k2, (32, 128), dtype=jnp.float32)
    outs = jax.block_until_ready(cosine_similarity(x1s, x2s))
    assert jnp.allclose(outs, _reference(x1s, x2s), atol=1e-2, rtol=1e-2), \
        "small-shape mismatch"

    # bf16 operands fed straight to the MXU, bf16 output writeback.
    x1b = x1.astype(jnp.bfloat16)
    x2b = x2.astype(jnp.bfloat16)
    outb = jax.block_until_ready(
        cosine_similarity(x1b, x2b, tm=128, tn=256, tk=128))
    refb = _reference(x1b.astype(jnp.float32), x2b.astype(jnp.float32))
    assert outb.dtype == jnp.bfloat16
    assert jnp.allclose(outb.astype(jnp.float32), refb, atol=2.5e-2, rtol=2.5e-2), \
        "bf16 mismatch"

    print("KERNEL_OK")
</pallas_src>

<mosaic_0001>
module attributes {stable_mosaic.version = 11 : i64} {
  func.func @_cosine_sim_kernel(%arg0: i32, %arg1: i32, %arg2: i32, %arg3: memref<128x128xf32, #tpu.memory_space<vmem>>, %arg4: memref<128x256xf32, #tpu.memory_space<vmem>>, %arg5: memref<128x1xf32, #tpu.memory_space<vmem>>, %arg6: memref<1x256xf32, #tpu.memory_space<vmem>>, %arg7: memref<128x256xf32, #tpu.memory_space<vmem>>, %arg8: memref<128x256xf32, #tpu.memory_space<vmem>>) attributes {dimension_semantics = [#tpu.dimension_semantics<parallel>, #tpu.dimension_semantics<parallel>, #tpu.dimension_semantics<arbitrary>], iteration_bounds = array<i64: 2, 2, 2>, scalar_prefetch = 0 : i64, scratch_operands = 1 : i64, tpu.core_type = #tpu.core_type<tc>, window_params = [{transform_indices = @transform_0, window_bounds = array<i64: 128, 128>}, {transform_indices = @transform_1, window_bounds = array<i64: 128, 256>}, {transform_indices = @transform_2, window_bounds = array<i64: 128, 1>}, {transform_indices = @transform_3, window_bounds = array<i64: 1, 256>}, {transform_indices = @transform_4, window_bounds = array<i64: 128, 256>}]} {
    %c0_i32 = arith.constant 0 : i32
    %0 = arith.cmpi eq, %arg2, %c0_i32 : i32
    %1 = arith.extui %0 : i1 to i32
    %c0_i32_0 = arith.constant 0 : i32
    %2 = arith.cmpi ne, %1, %c0_i32_0 : i32
    scf.if %2 {
      %cst_9 = arith.constant 0.000000e+00 : f32
      %12 = vector.broadcast %cst_9 : f32 to vector<128x256xf32>
      %c0_10 = arith.constant 0 : index
      %c0_11 = arith.constant 0 : index
      %13 = vector.load %arg8[%c0_10, %c0_11] : memref<128x256xf32, #tpu.memory_space<vmem>>, vector<128x256xf32>
      tpu.vector_store %arg8[%c0_10, %c0_11], %12 {strides = array<i32>} : memref<128x256xf32, #tpu.memory_space<vmem>>, vector<128x256xf32>,
    } else {
    }
    %c0 = arith.constant 0 : index
    %c0_1 = arith.constant 0 : index
    %3 = vector.load %arg8[%c0, %c0_1] : memref<128x256xf32, #tpu.memory_space<vmem>>, vector<128x256xf32>
    %c0_2 = arith.constant 0 : index
    %c0_3 = arith.constant 0 : index
    %4 = vector.load %arg3[%c0_2, %c0_3] : memref<128x128xf32, #tpu.memory_space<vmem>>, vector<128x128xf32>
    %c0_4 = arith.constant 0 : index
    %c0_5 = arith.constant 0 : index
    %5 = vector.load %arg4[%c0_4, %c0_5] : memref<128x256xf32, #tpu.memory_space<vmem>>, vector<128x256xf32>
    %cst = arith.constant dense<0.000000e+00> : vector<128x256xf32>
    %6 = tpu.matmul %4, %5, %cst {dimension_numbers = #tpu.dot_dimension_numbers<[1], [0], [0], [1], [0, 0, 1, 1], [], []>} : vector<128x128xf32>, vector<128x256xf32>, vector<128x256xf32> -> vector<128x256xf32>
    %7 = arith.addf %3, %6 : vector<128x256xf32>
    %c0_6 = arith.constant 0 : index
    %c0_7 = arith.constant 0 : index
    %8 = vector.load %arg8[%c0_6, %c0_7] : memref<128x256xf32, #tpu.memory_space<vmem>>, vector<128x256xf32>
    tpu.vector_store %arg8[%c0_6, %c0_7], %7 {strides = array<i32>} : memref<128x256xf32, #tpu.memory_space<vmem>>, vector<128x256xf32>,
    %c1_i32 = arith.constant 1 : i32
    %9 = arith.cmpi eq, %arg2, %c1_i32 : i32
    %10 = arith.extui %9 : i1 to i32
    %c0_i32_8 = arith.constant 0 : i32
    %11 = arith.cmpi ne, %10, %c0_i32_8 : i32
    scf.if %11 {
      %c0_9 = arith.constant 0 : index
      %c0_10 = arith.constant 0 : index
      %12 = vector.load %arg8[%c0_9, %c0_10] : memref<128x256xf32, #tpu.memory_space<vmem>>, vector<128x256xf32>
      %c0_11 = arith.constant 0 : index
      %c0_12 = arith.constant 0 : index
      %13 = vector.load %arg5[%c0_11, %c0_12] : memref<128x1xf32, #tpu.memory_space<vmem>>, vector<128x1xf32>
      %14 = vector.broadcast %13 : vector<128x1xf32> to vector<128x256xf32>
      %15 = arith.mulf %12, %14 : vector<128x256xf32>
      %c0_13 = arith.constant 0 : index
      %c0_14 = arith.constant 0 : index
      %16 = vector.load %arg6[%c0_13, %c0_14] : memref<1x256xf32, #tpu.memory_space<vmem>>, vector<1x256xf32>
      %17 = vector.broadcast %16 : vector<1x256xf32> to vector<128x256xf32>
      %18 = arith.mulf %15, %17 : vector<128x256xf32>
      %c0_15 = arith.constant 0 : index
      %c0_16 = arith.constant 0 : index
      %19 = vector.load %arg7[%c0_15, %c0_16] : memref<128x256xf32, #tpu.memory_space<vmem>>, vector<128x256xf32>
      tpu.vector_store %arg7[%c0_15, %c0_16], %18 {strides = array<i32>} : memref<128x256xf32, #tpu.memory_space<vmem>>, vector<128x256xf32>,
    } else {
    }
    return
  }
  func.func @transform_0(%arg0: i32, %arg1: i32, %arg2: i32) -> (i32, i32) {
    %c0_i32 = arith.constant 0 : i32
    return %arg0, %arg2 : i32, i32
  }
  func.func @transform_1(%arg0: i32, %arg1: i32, %arg2: i32) -> (i32, i32) {
    %c0_i32 = arith.constant 0 : i32
    return %arg2, %arg1 : i32, i32
  }
  func.func @transform_2(%arg0: i32, %arg1: i32, %arg2: i32) -> (i32, i32) {
    %c0_i32 = arith.constant 0 : i32
    %c0_i32_0 = arith.constant 0 : i32
    return %arg0, %c0_i32 : i32, i32
  }
  func.func @transform_3(%arg0: i32, %arg1: i32, %arg2: i32) -> (i32, i32) {
    %c0_i32 = arith.constant 0 : i32
    %c0_i32_0 = arith.constant 0 : i32
    return %c0_i32, %arg1 : i32, i32
  }
  func.func @transform_4(%arg0: i32, %arg1: i32, %arg2: i32) -> (i32, i32) {
    %c0_i32 = arith.constant 0 : i32
    return %arg0, %arg1 : i32, i32
  }
}

</mosaic_0001>

<bundles_post_ra>
// kernel: tpu_custom_call.1
= control target key start
LH: loop header
LB: loop body
LE: loop exit
PB: predicated region body
PF: predicated region fallthrough
CT: control target
= control target key end

     0   :  { %s2146_s0 = inlined_call_operand.hbm [shape: f32[256,256], index: 0, kind: input, shape index: {}]   ;;  %s2147_s1 = inlined_call_operand.hbm [shape: f32[256,512], index: 1, kind: input, shape index: {}]   ;;  %s2148_s2 = inlined_call_operand.vmem [shape: f32[256,1], index: 2, kind: input, shape index: {}]   ;;  %s2149_s3 = inlined_call_operand.vmem [shape: f32[1,512], index: 3, kind: input, shape index: {}]   ;;  %s2150_s4 = inlined_call_operand.hbm [shape: f32[256,512], index: 4, kind: output, shape index: {}]  }
   0x1   :  { %2166 = sst [smem:[#allocation20_spill]] %s2146_s0 }
   0x2   :  { %2167 = sst [smem:[#allocation21_spill]] %s2147_s1 }
   0x3   :  { %2168 = sst [smem:[#allocation22_spill]] %s2148_s2 }
   0x4   :  { %2169 = sst [smem:[#allocation23_spill]] %s2149_s3 }
   0x5   :  { %2170 = sst [smem:[#allocation24_spill]] %s2150_s4 }
   0x6   :  { %9 = vsyncpa [#allocation4], 0 }
   0x7   :  { %11 = vsyncpa [#allocation4 + $0x1], 0 }
   0x8   :  { %12 = vsyncpa [#allocation7], 0 }
   0x9   :  { %14 = vsyncpa [#allocation7 + $0x1], 0 }
   0xa   :  { %15 = vsyncpa [#allocation5], 0 }
   0xb   :  { %17 = vsyncpa [#allocation5 + $0x1], 0  ;;  %s1579_s15 = smov 0   ;;  %s1581_s16 = smov 0  }
   0xc   :  { %s1583_s17 = smov 0   ;;  %s1585_s18 = smov 0  }
   0xd   :  { %s1587_s19 = smov 0   ;;  %s1589_s20 = smov 0  }
   0xe   :  { %s1591_s21 = smov 0   ;;  %s1593_s22 = smov 0  }
   0xf   :  { %s1595_s23 = smov 0   ;;  %s1597_s24 = smov 0  }
  0x10   :  { %s1599_s25 = smov 0   ;;  %s1601_s26 = smov 0  }
  0x11   :  { %s1603_s27 = smov 0   ;;  %s1605_s28 = smov 0  }
  0x12   :  { %s1607_s29 = smov 0   ;;  %s1609_s30 = smov 0  }
  0x13 LB: > { %2171 = sst [smem:[#allocation12_spill]] %s1514_s24  ;;  %s1072_s5 = sadd.s32 4294967295, %s1538_s30   ;;  %s1538_s30 = sphi %s1609_s30, %s23_s30   ;;  %s1534_s29 = sphi %s1607_s29, %s2219_s29   ;;  %s1530_s28 = sphi %s1605_s28, %s2232_s28   ;;  %s1526_s27 = sphi %s1603_s27, %s2231_s27   ;;  %s1522_s26 = sphi %s1601_s26, %s2216_s26   ;;  %s1518_s25 = sphi %s1599_s25, %s2230_s25   ;;  %s1514_s24 = sphi %s1597_s24, %s2229_s24   ;;  %s1510_s23 = sphi %s1595_s23, %s2228_s23   ;;  %s1506_s22 = sphi %s1593_s22, %s2227_s22   ;;  %s1502_s21 = sphi %s1591_s21, %s2226_s21   ;;  %s1498_s20 = sphi %s1589_s20, %s2225_s20   ;;  %s1494_s19 = sphi %s1587_s19, %s2224_s19   ;;  %s1490_s18 = sphi %s1585_s18, %s2223_s18   ;;  %s1486_s17 = sphi %s1583_s17, %s2222_s17   ;;  %s1482_s16 = sphi %s1581_s16, %s2221_s16   ;;  %s1478_s15 = sphi %s1579_s15, %s2220_s15  }
  0x14   : > { %2172 = sst [smem:[#allocation13_spill]] %s1518_s25  ;;  %s35_s6 = sadd.s32 1, %s1526_s27 }
  0x15   : > { %2173 = sst [smem:[#allocation14_spill]] %s1522_s26  ;;  %p1659_p0 = scmp.ge.s32.totalorder %s35_s6, 2 }
  0x16   : > { %2174 = sst [smem:[#allocation15_spill]] %s1534_s29  ;;  %p58_p1 = scmp.ne.s32.totalorder %s1510_s23, %s1506_s22 }
  0x17   : > { %s2234_s6 = smov (%p1659_p0, %s35_s6), 0  ;;  %p2154_p2 = scmp.eq.s32.totalorder %s1538_s30, 0 }
  0x18   : > { %2176 = sst [smem:[#allocation16_spill]] %s2234_s6  ;;  %p64_p3 = scmp.ne.s32.totalorder %s1506_s22, %s1502_s21 }
  0x19   : > { %s1675_s10 = ssub.s32 %s1526_s27, %s2234_s6  ;;  %p1677_p4 = scmp.eq.s32.totalorder %s1072_s5, 0 }
  0x1a   : > { %p1683_p5 = por %p2154_p2, %p58_p1  ;;  %p1687_p6 = scmp.eq.s32.totalorder %s1072_s5, 7 }
  0x1b   : > { %s2177_s11 = scalar_select %p1677_p4, 1, 0 }
  0x1c   : > { %s2179_s13 = scalar_select %p1687_p6, 1, 0 }
  0x1d   : > { %p1693_p7 = por %p1677_p4, %p64_p3  ;;  %p2153_p8 = scmp.lt.s32.totalorder %s1538_s30, 8 }
  0x1e   : > { %s196_s21 = sand.u32 1, %s1510_s23   ;;  %s1101_s8 = sshll.u32 %s1534_s29, 5 }
  0x1f   : > { %s2180_s14 = scalar_select %p1693_p7, 1, 0 }
  0x20   : > { %s1076_s9 = sshll.u32 %s196_s21, 7  ;;  %s206_s6 = sadd.s32 %s1526_s27, %s1101_s8 }
  0x21   : > { %s200_s4 = scalar_lea.vmem [#allocation3], %s1076_s9  ;;  %s1079_s3 = sshll.u32 %s206_s6, 7 }
  0x22   : > { %s209_s24 = sshll.u32 %s200_s4, 4  ;;  %s2181_s0 = sld [smem:[#allocation20_spill]]  ;;  %s1701_s24 = int_to_ptr.vmem [resolvable:$true] %s209_s24 }
  0x23   : > { %p1712_p9 = pnand %p2153_p8, %p1683_p5  ;;  %s1716_s4 = scalar_lea.sflag [#allocation4], %s196_s21 }
  0x25   : > { %p1314_p11 = pneg %p1712_p9 }
  0x28   : > { %s1706_s25 = scalar_lea.hbm %s2181_s0, %s1079_s3  ;;  %s1317_s8 = scalar_lea.hbm %s2181_s0, 8192 }
  0x29   : > { %s1312_s6 = scalar_lea.hbm %s1706_s25, 2048  ;;  %p1318_p1 = scmp.lt.u32.totalorder %s1706_s25, %s2181_s0 }
  0x2a   : > { %p1313_p10 = scmp.ne.s32.totalorder %s1706_s25, %s1312_s6  ;;  %p1319_p3 = scmp.lt.u32.totalorder %s1317_s8, %s1312_s6 }
  0x2b   : > { %p1321_p8 = scmp.lt.u32.totalorder %s1312_s6, %s1706_s25 }
  0x2c   : > { %p1315_p12 = pnand %p1314_p11, %p1313_p10  ;;  %p1320_p5 = por %p1319_p3, %p1318_p1 }
  0x2e   : > { %p1316_p13 = pneg %p1315_p12  ;;  %p1322_p2 = por %p1321_p8, %p1320_p5 }
  0x30   : > { %p1323_p7 = pnand %p1322_p2, %p1316_p13 }
  0x32   : > { %1326 = shalt.err (!%p1323_p7)
}
  0x33   : > { %s1327_s21 = scalar_lea.vmem %s1701_s24, 2048  ;;  %s1540_s5 = smov [#allocation3]  }
  0x34   : > { %p1328_p10 = scmp.ne.s32.totalorder %s1701_s24, %s1327_s21  ;;  %s1332_s2 = sshll.u32 %s1540_s5, 4  ;;  %s1333_s2 = int_to_ptr.vmem [resolvable:$false] %s1332_s2 }
  0x35   : > { %s1334_s3 = scalar_lea.vmem %s1333_s2, 4096  ;;  %p1335_p4 = scmp.lt.s32.totalorder %s1701_s24, %s1333_s2 }
  0x36   : > { %p1330_p12 = pnand %p1328_p10, %p1314_p11  ;;  %p1336_p1 = scmp.lt.s32.totalorder %s1334_s3, %s1327_s21 }
  0x38   : > { %p1331_p6 = pneg %p1330_p12  ;;  %p1337_p3 = por %p1336_p1, %p1335_p4 }
  0x3a   : > { %p1338_p8 = pnand %p1337_p3, %p1331_p6 }
  0x3c   : > { %1341 = shalt.err (!%p1338_p8)
}
  0x3d   : > { %s2157_s6 = smov 256   ;;  %s1542_s8 = smov 128  }
  0x3e   : > { %s1543_s9 = smov 8   ;;  %p1085_p2 = scmp.ge.s32.totalorder %s1538_s30, 1 }
  0x3f   : > { %1161 = dma.hbm_to_vmem [thread:$0]  (!%p1712_p9), %s1706_s25, 2048, %s1701_s24, %s1716_s4, %s2157_s6, %s1542_s8, %s1543_s9  }
  0x40   : > { %p258_p4 = scmp.lt.s32.totalorder %s1538_s30, 9  ;;  %s1073_s21 = sadd.s32 4294967294, %s1538_s30  }
  0x41   : > { %s38_s5 = sadd.s32 1, %s1530_s28  ;;  %s79_s2 = sadd.s32 1, %s1498_s20 }
  0x42   : > { %p1747_p6 = pnand %p1085_p2, %p258_p4  ;;  %s2236_s5 = smov (!%p1659_p0, %s38_s5), %s1530_s28 }
  0x43   : > { %p86_p7 = scmp.ne.s32.totalorder %s1498_s20, %s1494_s19  ;;  %p92_p9 = scmp.ne.s32.totalorder %s1494_s19, %s1490_s18 }
  0x44   : > { %p40_p11 = scmp.ge.s32.totalorder %s2236_s5, 2  ;;  %s159_s24 = sadd.s32 1, %s1486_s17 }
  0x45   : > { %p2184_p13 = scmp.eq.s32.totalorder %s1538_s30, 0  ;;  %p2186_p10 = scmp.ne.s32.totalorder %s2177_s11, 0 }
  0x46   : > { %s2238_s5 = smov (%p40_p11, %s2236_s5), 0  ;;  %s2189_s7 = sadd.s32 1, %s1534_s29 }
  0x47   : > { %p1764_p5 = por %p86_p7, %p2184_p13  ;;  %p1770_p12 = por %p92_p9, %p2186_p10 }
  0x48   : > { %2188 = sst [smem:[#allocation17_spill]] %s2238_s5  ;;  %s2240_s7 = smov (!%p40_p11, %s2189_s7), %s1534_s29 }
  0x49   : > { %s2187_s26 = scalar_select %p1770_p12, 1, 0 }
  0x4a   : > { %s75_s18 = ssub.s32 %s1530_s28, %s2238_s5  ;;  %p169_p0 = scmp.ne.s32.totalorder %s1486_s17, %s1482_s16 }
  0x4b   : > { %p44_p1 = scmp.ge.s32.totalorder %s2240_s7, 2  ;;  %s76_s4 = sor.u32 %s75_s18, %s1675_s10 }
  0x4c   : > { %p77_p3 = scmp.eq.s32.totalorder %s76_s4, 0  ;;  %p2190_p8 = scmp.ne.s32.totalorder %s2179_s13, 0 }
  0x4d   : > { %s2242_s7 = smov (%p44_p1, %s2240_s7), 0  ;;  %p175_p4 = scmp.ne.s32.totalorder %s1482_s16, %s1478_s15 }
  0x4e   : > { %p1786_p2 = por %p2190_p8, %p169_p0  ;;  %2193 = sst [smem:[#allocation19_spill]] %s2242_s7 }
  0x4f   : > { %s1793_s3 = scalar_select %p77_p3, %s1498_s20, %s79_s2  }
  0x50   : > { %s2191_s11 = scalar_select %p1786_p2, 1, 0 }
  0x51   : > { %s46_s8 = ssub.s32 %s1534_s29, %s2242_s7  ;;  %p176_p11 = scmp.eq.s32.totalorder %s1073_s21, 7 }
  0x52   : > { %2192 = sst [smem:[#allocation18_spill]] %s2191_s11  ;;  %s48_s9 = sor.u32 %s1675_s10, %s46_s8 }
  0x53   : > { %s156_s6 = sor.u32 %s75_s18, %s46_s8  ;;  %p49_p7 = scmp.eq.s32.totalorder %s48_s9, 0 }
  0x54   : > { %p157_p9 = scmp.eq.s32.totalorder %s156_s6, 0  ;;  %s219_s13 = sand.u32 1, %s1498_s20  }
  0x55   : > { %s2194_s4 = sadd.s32 1, %s1510_s23  ;;  %p1809_p13 = por %p176_p11, %p175_p4 }
  0x56   : > { %s1804_s0 = scalar_select %p49_p7, %s1510_s23, %s2194_s4  }
  0x57   : > { %s1807_s5 = scalar_select %p157_p9, %s1486_s17, %s159_s24  }
  0x58   : > { %s2195_s11 = scalar_select %p1809_p13, 1, 0 }
  0x59   : > { %s1080_s2 = sshll.u32 %s219_s13, 8  ;;  %s1082_s7 = sshll.u32 %s1530_s28, 1 }
  0x5a   : > { %s1102_s29 = sshll.u32 %s1526_s27, 6  ;;  %s223_s18 = scalar_lea.vmem [#allocation6], %s1080_s2 }
  0x5b   : > { %s230_s10 = sadd.s32 %s1102_s29, %s1082_s7  ;;  %s233_s8 = sshll.u32 %s223_s18, 4  ;;  %s1815_s8 = int_to_ptr.vmem [resolvable:$true] %s233_s8 }
  0x5c   : > { %s1084_s9 = sshll.u32 %s230_s10, 7  ;;  %s2196_s1 = sld [smem:[#allocation21_spill]] }
  0x5d   : > { %p2197_p10 = scmp.lt.s32.totalorder %s1538_s30, 8  ;;  %s1830_s29 = scalar_lea.sflag [#allocation7], %s219_s13 }
  0x5f   : > { %p1826_p0 = pnand %p2197_p10, %p1764_p5 }
  0x61   : > { %p1344_p3 = pneg %p1826_p0 }
  0x62   : > { %s1820_s4 = scalar_lea.hbm %s2196_s1, %s1084_s9  ;;  %s1347_s10 = scalar_lea.hbm %s2196_s1, 16384 }
  0x63   : > { %s1342_s7 = scalar_lea.hbm %s1820_s4, 4096  ;;  %p1348_p5 = scmp.lt.u32.totalorder %s1820_s4, %s2196_s1 }
  0x64   : > { %p1343_p1 = scmp.ne.s32.totalorder %s1820_s4, %s1342_s7  ;;  %p1349_p7 = scmp.lt.u32.totalorder %s1347_s10, %s1342_s7 }
  0x65   : > { %p1351_p11 = scmp.lt.u32.totalorder %s1342_s7, %s1820_s4 }
  0x66   : > { %p1345_p8 = pnand %p1344_p3, %p1343_p1  ;;  %p1350_p9 = por %p1349_p7, %p1348_p5 }
  0x68   : > { %p1346_p4 = pneg %p1345_p8  ;;  %p1352_p10 = por %p1351_p11, %p1350_p9 }
  0x6a   : > { %p1353_p13 = pnand %p1352_p10, %p1346_p4 }
  0x6c   : > { %1356 = shalt.err (!%p1353_p13)
}
  0x6d   : > { %s1357_s13 = scalar_lea.vmem %s1815_s8, 4096  ;;  %s1544_s6 = smov [#allocation6]  }
  0x6e   : > { %p1358_p1 = scmp.ne.s32.totalorder %s1815_s8, %s1357_s13  ;;  %s1362_s21 = sshll.u32 %s1544_s6, 4  ;;  %s1363_s21 = int_to_ptr.vmem [resolvable:$false] %s1362_s21 }
  0x6f   : > { %s1364_s25 = scalar_lea.vmem %s1363_s21, 8192  ;;  %p1365_p12 = scmp.lt.s32.totalorder %s1815_s8, %s1363_s21 }
  0x70   : > { %p1360_p8 = pnand %p1358_p1, %p1344_p3  ;;  %p1366_p5 = scmp.lt.s32.totalorder %s1364_s25, %s1357_s13 }
  0x72   : > { %p1361_p2 = pneg %p1360_p8  ;;  %p1367_p7 = por %p1366_p5, %p1365_p12 }
  0x74   : > { %p1368_p9 = pnand %p1367_p7, %p1361_p2 }
  0x76   : > { %1371 = shalt.err (!%p1368_p9)
}
  0x77   : > { %s1545_s7 = smov 512   ;;  %s1546_s2 = smov 16  }
  0x78   : > { %s2199_s10 = smov 256   ;;  %262 = sbr.rel (%p1747_p6) target bundleno = 618 (0x26a), region = 36 }
  0x79   : > { %1164 = dma.hbm_to_vmem [thread:$0]  (!%p1826_p0), %s1820_s4, 4096, %s1815_s8, %s1830_s29, %s1545_s7, %s2199_s10, %s1546_s2  }
  0x7a   : > { %s264_s18 = sand.u32 (!%p1747_p6), 1, %s1506_s22   ;;  %p2200_p12 = scmp.ne.s32.totalorder (!%p1747_p6), %s2180_s14, 0 }
  0x7b   : > { %s1086_s9 = sshll.u32 (!%p1747_p6), %s264_s18, 7  ;;  %s265_s13 = scalar_lea.sflag (!%p1747_p6), [#allocation4], %s264_s18 }
  0x7c   : > { %s1862_s6 = scalar_lea.vmem (!%p1747_p6), [#allocation3], %s1086_s9 }
  0x7f   : > { %1465 = dma.done.wait (%p2200_p12), %s265_s13, 2048  }
  0x80   : > { %1467 = vsyncadd (%p2200_p12), %s265_s13, 4294965248  ;;  %s273_s24 = sand.u32 1, %s1494_s19   ;;  %p2201_p6 = scmp.ne.s32.totalorder %s2187_s26, 0 }
  0x81   : > { %s1087_s21 = sshll.u32 %s273_s24, 8  ;;  %s274_s8 = scalar_lea.sflag [#allocation7], %s273_s24 }
  0x82   : > { %s1869_s4 = scalar_lea.vmem [#allocation6], %s1087_s21 }
  0x83   : > { %1469 = dma.done.wait (%p2201_p6), %s274_s8, 4096  }
  0x84   : > { %1471 = vsyncadd (%p2201_p6), %s274_s8, 4294963200  ;;  %s2202_s12 = sld [smem:[#allocation14_spill]]  ;;  %s2203_s29 = sld [smem:[#allocation13_spill]] }
  0x85   : > { %s2165_s25 = sand.u32 1, %s1482_s16   ;;  %s2204_s26 = sld [smem:[#allocation22_spill]] }
  0x86   : > { %s1088_s14 = sshll.u32 %s2165_s25, 8 }
  0x87   : > { %s1895_s1 = scalar_lea.vmem [#allocation8], %s1088_s14 }
  0x8a   : > { %s1089_s7 = sshll.u32 %s2202_s12, 4  ;;  %s1880_s2 = sshll.u32 %s2203_s29, 1 }
  0x8b   : > { %p320_p2 = scmp.lt.s32.totalorder %s1089_s7, 31  ;;  %p326_p13 = scmp.lt.s32.totalorder %s1880_s2, 3 }
  0x8c   : > { %s2205_s12 = sld [smem:[#allocation23_spill]]  ;;  %s2206_s29 = sld [smem:[#allocation12_spill]] }
  0x8d   : > { %s2244_s7 = smov (!%p320_p2, %s1089_s7), 31 }
  0x8e   : > { %s1090_s10 = sshll.u32 %s2244_s7, 3 }
  0x8f   : > { %s1886_s13 = scalar_lea.vmem %s2204_s26, %s1090_s10 }
  0x90   : > { %s1889_s24 = scalar_select %p326_p13, %s1880_s2, 3 }
  0x92   : > { %s328_s25 = scalar_lea.vmem %s2205_s12, %s1889_s24  ;;  %p1092_p0 = scmp.ne.s32.totalorder %s2206_s29, 0 }
  0x93   : > { %v1547_v0 = vmov (!%p1092_p0), 0.0  }
  0x94   : > { %335 = sbr.rel (%p1092_p0) target bundleno = 164 (0xa4), region = 48  ;;  %336 = vst [vmem:[#allocation2] sm:$0xff] (!%p1092_p0), %v1547_v0  ;;  %337 = vst [vmem:[#allocation2 + $0x8] sm:$0xff] (!%p1092_p0), %v1547_v0 }
  0x95   : > { %338 = vst [vmem:[#allocation2 + $0x10] sm:$0xff] (!%p1092_p0), %v1547_v0  ;;  %339 = vst [vmem:[#allocation2 + $0x18] sm:$0xff] (!%p1092_p0), %v1547_v0 }
  0x96   : > { %340 = vst [vmem:[#allocation2 + $0x20] sm:$0xff] (!%p1092_p0), %v1547_v0  ;;  %341 = vst [vmem:[#allocation2 + $0x28] sm:$0xff] (!%p1092_p0), %v1547_v0 }
  0x97   : > { %342 = vst [vmem:[#allocation2 + $0x30] sm:$0xff] (!%p1092_p0), %v1547_v0  ;;  %343 = vst [vmem:[#allocation2 + $0x38] sm:$0xff] (!%p1092_p0), %v1547_v0 }
  0x98   : > { %344 = vst [vmem:[#allocation2 + $0x40] sm:$0xff] (!%p1092_p0), %v1547_v0  ;;  %345 = vst [vmem:[#allocation2 + $0x48] sm:$0xff] (!%p1092_p0), %v1547_v0 }
  0x99   : > { %346 = vst [vmem:[#allocation2 + $0x50] sm:$0xff] (!%p1092_p0), %v1547_v0  ;;  %347 = vst [vmem:[#allocation2 + $0x58] sm:$0xff] (!%p1092_p0), %v1547_v0 }
  0x9a   : > { %348 = vst [vmem:[#allocation2 + $0x60] sm:$0xff] (!%p1092_p0), %v1547_v0  ;;  %349 = vst [vmem:[#allocation2 + $0x68] sm:$0xff] (!%p1092_p0), %v1547_v0 }
  0x9b   : > { %350 = vst [vmem:[#allocation2 + $0x70] sm:$0xff] %v1547_v0  ;;  %351 = vst [vmem:[#allocation2 + $0x78] sm:$0xff] %v1547_v0 }
  0x9c   : > { %352 = vst [vmem:[#allocation2 + $0x80] sm:$0xff] %v1547_v0  ;;  %353 = vst [vmem:[#allocation2 + $0x88] sm:$0xff] %v1547_v0 }
  0x9d   : > { %354 = vst [vmem:[#allocation2 + $0x90] sm:$0xff] %v1547_v0  ;;  %355 = vst [vmem:[#allocation2 + $0x98] sm:$0xff] %v1547_v0 }
  0x9e   : > { %356 = vst [vmem:[#allocation2 + $0xa0] sm:$0xff] %v1547_v0  ;;  %357 = vst [vmem:[#allocation2 + $0xa8] sm:$0xff] %v1547_v0 }
  0x9f   : > { %358 = vst [vmem:[#allocation2 + $0xb0] sm:$0xff] %v1547_v0  ;;  %359 = vst [vmem:[#allocation2 + $0xb8] sm:$0xff] %v1547_v0 }
  0xa0   : > { %360 = vst [vmem:[#allocation2 + $0xc0] sm:$0xff] %v1547_v0  ;;  %361 = vst [vmem:[#allocation2 + $0xc8] sm:$0xff] %v1547_v0 }
  0xa1   : > { %362 = vst [vmem:[#allocation2 + $0xd0] sm:$0xff] %v1547_v0  ;;  %363 = vst [vmem:[#allocation2 + $0xd8] sm:$0xff] %v1547_v0 }
  0xa2   : > { %364 = vst [vmem:[#allocation2 + $0xe0] sm:$0xff] %v1547_v0  ;;  %365 = vst [vmem:[#allocation2 + $0xe8] sm:$0xff] %v1547_v0 }
  0xa3   : > { %366 = vst [vmem:[#allocation2 + $0xf0] sm:$0xff] %v1547_v0  ;;  %367 = vst [vmem:[#allocation2 + $0xf8] sm:$0xff] %v1547_v0 }
  0xa4 PF: > { %v417_v1 = vld [vmem:[%s1869_s4 + $0x8] sm:$0xff]  ;;  %v419_v2 = vld [vmem:[%s1869_s4 + $0x18] sm:$0xff]  ;;  %v416_v3 = vld [vmem:[%s1869_s4] sm:$0xff]  ;;  %v1548_v8 = vmov 0.0  }
  0xa5   : > { %v1104_v4 = vpack.c.bf16 %v419_v2, %v417_v1  ;;  %v418_v5 = vld [vmem:[%s1869_s4 + $0x10] sm:$0xff]  ;;  %v421_v6 = vld [vmem:[%s1869_s4 + $0x28] sm:$0xff]  ;;  %v423_v7 = vld [vmem:[%s1869_s4 + $0x38] sm:$0xff]  ;;  %512 = vmatprep.mubr.f32.mxu0 %v1548_v8  ;;  %560 = vmatprep.mubr.f32.mxu1 %v1548_v8 }
  0xa6   : > { %v1106_v9 = vpack.c.bf16 %v418_v5, %v416_v3  ;;  %v1108_v10 = vpack.c.bf16 %v423_v7, %v421_v6  ;;  %v420_v11 = vld [vmem:[%s1869_s4 + $0x20] sm:$0xff]  ;;  %v422_v12 = vld [vmem:[%s1869_s4 + $0x30] sm:$0xff]  ;;  %v425_v13 = vld [vmem:[%s1869_s4 + $0x48] sm:$0xff] }
  0xa7   : > { %1105 = vmatprep.subr.bf16.mxu0 %v1104_v4  ;;  %1136 = vmatprep.subr.bf16.mxu1 %v1104_v4  ;;  %v427_v14 = vld [vmem:[%s1869_s4 + $0x58] sm:$0xff]  ;;  %v1110_v15 = vpack.c.bf16 %v422_v12, %v420_v11  ;;  %v424_v17 = vld [vmem:[%s1869_s4 + $0x40] sm:$0xff]  ;;  %v426_v18 = vld [vmem:[%s1869_s4 + $0x50] sm:$0xff] }
  0xa8   : > { %1107 = vmatpush1.bf16.msra.mxu0 %v1106_v9  ;;  %1144 = vmatpush1.bf16.msra.mxu1 %v1106_v9  ;;  %v1112_v16 = vpack.c.bf16 %v427_v14, %v425_v13  ;;  %v429_v19 = vld [vmem:[%s1869_s4 + $0x68] sm:$0xff]  ;;  %v431_v20 = vld [vmem:[%s1869_s4 + $0x78] sm:$0xff]  ;;  %v1114_v21 = vpack.c.bf16 %v426_v18, %v424_v17  ;;  %v428_v23 = vld [vmem:[%s1869_s4 + $0x60] sm:$0xff] }
  0xa9   : > { %1109 = vmatprep.subr.bf16.mxu0 %v1108_v10  ;;  %1137 = vmatprep.subr.bf16.mxu1 %v1108_v10  ;;  %v1116_v22 = vpack.c.bf16 %v431_v20, %v429_v19  ;;  %v430_v24 = vld [vmem:[%s1869_s4 + $0x70] sm:$0xff]  ;;  %v433_v25 = vld [vmem:[%s1869_s4 + $0x88] sm:$0xff]  ;;  %v435_v26 = vld [vmem:[%s1869_s4 + $0x98] sm:$0xff] }
  0xaa   : > { %v1118_v27 = vpack.c.bf16 %v430_v24, %v428_v23  ;;  %v1120_v28 = vpack.c.bf16 %v435_v26, %v433_v25  ;;  %v432_v29 = vld [vmem:[%s1869_s4 + $0x80] sm:$0xff]  ;;  %v434_v30 = vld [vmem:[%s1869_s4 + $0x90] sm:$0xff]  ;;  %v437_v31 = vld [vmem:[%s1869_s4 + $0xa8] sm:$0xff] }
  0xab   : > { %v439_v32 = vld [vmem:[%s1869_s4 + $0xb8] sm:$0xff]  ;;  %v1122_v33 = vpack.c.bf16 %v434_v30, %v432_v29  ;;  %v436_v35 = vld [vmem:[%s1869_s4 + $0xa0] sm:$0xff]  ;;  %v438_v36 = vld [vmem:[%s1869_s4 + $0xb0] sm:$0xff] }
  0xac   : > { %1111 = vmatpush1.bf16.msra.mxu0 %v1110_v15  ;;  %1145 = vmatpush1.bf16.msra.mxu1 %v1110_v15  ;;  %v1124_v34 = vpack.c.bf16 %v439_v32, %v437_v31  ;;  %v441_v37 = vld [vmem:[%s1869_s4 + $0xc8] sm:$0xff]  ;;  %v443_v38 = vld [vmem:[%s1869_s4 + $0xd8] sm:$0xff]  ;;  %v1126_v39 = vpack.c.bf16 %v438_v36, %v436_v35  ;;  %v440_v41 = vld [vmem:[%s1869_s4 + $0xc0] sm:$0xff] }
  0xad   : > { %1113 = vmatprep.subr.bf16.mxu0 %v1112_v16  ;;  %1138 = vmatprep.subr.bf16.mxu1 %v1112_v16  ;;  %v1128_v40 = vpack.c.bf16 %v443_v38, %v441_v37  ;;  %v442_v42 = vld [vmem:[%s1869_s4 + $0xd0] sm:$0xff]  ;;  %v445_v43 = vld [vmem:[%s1869_s4 + $0xe8] sm:$0xff]  ;;  %v447_v44 = vld [vmem:[%s1869_s4 + $0xf8] sm:$0xff] }
  0xae   : > { %v1130_v45 = vpack.c.bf16 %v442_v42, %v440_v41  ;;  %v1132_v46 = vpack.c.bf16 %v447_v44, %v445_v43  ;;  %v444_v47 = vld [vmem:[%s1869_s4 + $0xe0] sm:$0xff]  ;;  %v446_v48 = vld [vmem:[%s1869_s4 + $0xf0] sm:$0xff]  ;;  %v401_v52 = vld [vmem:[%s1862_s6 + $0x8] sm:$0xff] }
  0xaf   : > { %v1134_v49 = vpack.c.bf16 %v446_v48, %v444_v47  ;;  %v400_v50 = vld [vmem:[%s1862_s6] sm:$0xff]  ;;  %v409_v53 = vld [vmem:[%s1862_s6 + $0x48] sm:$0xff]  ;;  %v402_v54 = vld [vmem:[%s1862_s6 + $0x10] sm:$0xff] }
  0xb0   : > { %1115 = vmatpush1.bf16.msra.mxu0 %v1114_v21  ;;  %1146 = vmatpush1.bf16.msra.mxu1 %v1114_v21  ;;  %v408_v51 = vld [vmem:[%s1862_s6 + $0x40] sm:$0xff]  ;;  %v410_v55 = vld [vmem:[%s1862_s6 + $0x50] sm:$0xff]  ;;  %v403_v56 = vld [vmem:[%s1862_s6 + $0x18] sm:$0xff] }
  0xb1   : > { %1117 = vmatprep.subr.bf16.mxu0 %v1116_v22  ;;  %1139 = vmatprep.subr.bf16.mxu1 %v1116_v22  ;;  %v411_v57 = vld [vmem:[%s1862_s6 + $0x58] sm:$0xff]  ;;  %v404_v58 = vld [vmem:[%s1862_s6 + $0x20] sm:$0xff]  ;;  %v405_v60 = vld [vmem:[%s1862_s6 + $0x28] sm:$0xff] }
  0xb2   : > { %v412_v59 = vld [vmem:[%s1862_s6 + $0x60] sm:$0xff]  ;;  %v413_v61 = vld [vmem:[%s1862_s6 + $0x68] sm:$0xff]  ;;  %v406_v62 = vld [vmem:[%s1862_s6 + $0x30] sm:$0xff] }
  0xb3   : > { %v414_v63 = vld [vmem:[%s1862_s6 + $0x70] sm:$0xff]  ;;  %v407_v0 = vld [vmem:[%s1862_s6 + $0x38] sm:$0xff]  ;;  %v368_v2 = vld [vmem:[#allocation2] sm:$0xff] }
  0xb4   : > { %1119 = vmatpush1.bf16.msra.mxu0 %v1118_v27  ;;  %1147 = vmatpush1.bf16.msra.mxu1 %v1118_v27  ;;  %v415_v1 = vld [vmem:[%s1862_s6 + $0x78] sm:$0xff]  ;;  %v384_v3 = vld [vmem:[#allocation2 + $0x80] sm:$0xff]  ;;  %v369_v4 = vld [vmem:[#allocation2 + $0x8] sm:$0xff]  ;;  %s2207_s6 = sld [smem:[#allocation12_spill]] }
  0xb5   : > { %1121 = vmatprep.subr.bf16.mxu0 %v1120_v28  ;;  %1140 = vmatprep.subr.bf16.mxu1 %v1120_v28  ;;  %v385_v5 = vld [vmem:[#allocation2 + $0x88] sm:$0xff]  ;;  %v370_v15 = vld [vmem:[#allocation2 + $0x10] sm:$0xff]  ;;  %v387_v17 = vld [vmem:[#allocation2 + $0x98] sm:$0xff] }
  0xb6   : > { %v386_v16 = vld [vmem:[#allocation2 + $0x90] sm:$0xff]  ;;  %v372_v26 = vld [vmem:[#allocation2 + $0x20] sm:$0xff]  ;;  %v373_v28 = vld [vmem:[#allocation2 + $0x28] sm:$0xff] }
  0xb7   : > { %v388_v27 = vld [vmem:[#allocation2 + $0xa0] sm:$0xff]  ;;  %v389_v29 = vld [vmem:[#allocation2 + $0xa8] sm:$0xff]  ;;  %v374_v38 = vld [vmem:[#allocation2 + $0x30] sm:$0xff] }
  0xb8   : > { %1123 = vmatpush1.bf16.msra.mxu0 %v1122_v33  ;;  %1148 = vmatpush1.bf16.msra.mxu1 %v1122_v33  ;;  %v391_v41 = vld [vmem:[#allocation2 + $0xb8] sm:$0xff] }
  0xb9   : > { %1125 = vmatprep.subr.bf16.mxu0 %v1124_v34  ;;  %1141 = vmatprep.subr.bf16.mxu1 %v1124_v34 }
  0xba   : > { %p1093_p3 = scmp.ne.s32.totalorder %s2207_s6, 1 }
  0xbc   : > { %1127 = vmatpush1.bf16.msra.mxu0 %v1126_v39  ;;  %1149 = vmatpush1.bf16.msra.mxu1 %v1126_v39  ;;  %v390_v39 = vld [vmem:[#allocation2 + $0xb0] sm:$0xff] }
  0xbd   : > { %1129 = vmatprep.subr.bf16.mxu0 %v1128_v40  ;;  %1142 = vmatprep.subr.bf16.mxu1 %v1128_v40  ;;  %v375_v40 = vld [vmem:[#allocation2 + $0x38] sm:$0xff] }
  0xc0   : > { %1131 = vmatpush1.bf16.msra.mxu0 %v1130_v45  ;;  %1150 = vmatpush1.bf16.msra.mxu1 %v1130_v45 }
  0xc1   : > { %1133 = vmatprep.subr.bf16.mxu0 %v1132_v46  ;;  %1143 = vmatprep.subr.bf16.mxu1 %v1132_v46 }
  0xc4   : > { %1135 = vmatpush1.bf16.msra.mxu0 %v1134_v49  ;;  %1151 = vmatpush1.bf16.msra.mxu1 %v1134_v49 }
  0xc7   : > { %513 = vmatmul.mubr.f32.vlgmr.msra.gmra.mrb[0].mxu0 %v400_v50  ;;  %561 = vmatmul.mubr.f32.vlgmr.msra.gmra.mrb[0].mxu1 %v408_v51  ;;  %v376_v50 = vld [vmem:[#allocation2 + $0x40] sm:$0xff] }
  0xc8   : > { %518 = vmatprep.mubr.f32.mxu0 %v1548_v8  ;;  %566 = vmatprep.mubr.f32.mxu1 %v1548_v8  ;;  %v392_v51 = vld [vmem:[#allocation2 + $0xc0] sm:$0xff] }
  0xcb   : > { %519 = vmatmul.mubr.f32.gmra.mrb[2].mxu0 %v401_v52  ;;  %567 = vmatmul.mubr.f32.gmra.mrb[2].mxu1 %v409_v53  ;;  %v377_v52 = vld [vmem:[#allocation2 + $0x48] sm:$0xff] }
  0xcc   : > { %524 = vmatprep.mubr.f32.mxu0 %v1548_v8  ;;  %572 = vmatprep.mubr.f32.mxu1 %v1548_v8  ;;  %v393_v53 = vld [vmem:[#allocation2 + $0xc8] sm:$0xff] }
  0xcf   : > { %525 = vmatmul.mubr.f32.gmra.mrb[4].mxu0 %v402_v54  ;;  %573 = vmatmul.mubr.f32.gmra.mrb[4].mxu1 %v410_v55 }
  0xd0   : > { %530 = vmatprep.mubr.f32.mxu0 %v1548_v8  ;;  %578 = vmatprep.mubr.f32.mxu1 %v1548_v8 }
  0xd3   : > { %531 = vmatmul.mubr.f32.gmra.mrb[6].mxu0 %v403_v56  ;;  %579 = vmatmul.mubr.f32.gmra.mrb[6].mxu1 %v411_v57 }
  0xd4   : > { %536 = vmatprep.mubr.f32.mxu0 %v1548_v8  ;;  %584 = vmatprep.mubr.f32.mxu1 %v1548_v8 }
  0xd7   : > { %537 = vmatmul.mubr.f32.gmra.mrb[8].mxu0 %v404_v58  ;;  %585 = vmatmul.mubr.f32.gmra.mrb[8].mxu1 %v412_v59 }
  0xd8   : > { %542 = vmatprep.mubr.f32.mxu0 %v1548_v8  ;;  %590 = vmatprep.mubr.f32.mxu1 %v1548_v8 }
  0xdb   : > { %543 = vmatmul.mubr.f32.gmra.mrb[10].mxu0 %v405_v60  ;;  %591 = vmatmul.mubr.f32.gmra.mrb[10].mxu1 %v413_v61 }
  0xdc   : > { %548 = vmatprep.mubr.f32.mxu0 %v1548_v8  ;;  %596 = vmatprep.mubr.f32.mxu1 %v1548_v8 }
  0xdf   : > { %549 = vmatmul.mubr.f32.gmra.mrb[12].mxu0 %v406_v62  ;;  %597 = vmatmul.mubr.f32.gmra.mrb[12].mxu1 %v414_v63  ;;  %v378_v62 = vld [vmem:[#allocation2 + $0x50] sm:$0xff] }
  0xe0   : > { %554 = vmatprep.mubr.f32.mxu0 %v1548_v8  ;;  %602 = vmatprep.mubr.f32.mxu1 %v1548_v8  ;;  %v371_v8 = vld [vmem:[#allocation2 + $0x18] sm:$0xff]  ;;  %v394_v63 = vld [vmem:[#allocation2 + $0xd0] sm:$0xff] }
  0xe3   : > { %555 = vmatmul.mubr.f32.gmra.mrb[14].mxu0 %v407_v0  ;;  %603 = vmatmul.mubr.f32.gmra.mrb[14].mxu1 %v415_v1  ;;  %v379_v0 = vld [vmem:[#allocation2 + $0x58] sm:$0xff] }
  0xe4   : > { %v395_v1 = vld [vmem:[#allocation2 + $0xd8] sm:$0xff] }
 0x19a   : > { %v514_v6 = vpop.f32.mrb[0].mxu0  ;;  %v562_v7 = vpop.f32.mrb[0].mxu1 }
 0x19b   : > { %v609_v9 = vadd.f32 %v514_v6, %v368_v2  ;;  %v625_v10 = vadd.f32 %v562_v7, %v384_v3  ;;  %v516_v11 = vpop.f32.mrb[1].mxu0  ;;  %v564_v12 = vpop.f32.mrb[1].mxu1 }
 0x19c   : > { %v610_v13 = vadd.f32 %v516_v11, %v369_v4  ;;  %v626_v14 = vadd.f32 %v564_v12, %v385_v5  ;;  %v380_v11 = vld [vmem:[#allocation2 + $0x60] sm:$0xff] }
 0x19d   : > { %641 = vst [vmem:[#allocation2] sm:$0xff] %v609_v9  ;;  %657 = vst [vmem:[#allocation2 + $0x80] sm:$0xff] %v625_v10  ;;  %v396_v12 = vld [vmem:[#allocation2 + $0xe0] sm:$0xff] }
 0x19e   : > { %642 = vst [vmem:[#allocation2 + $0x8] sm:$0xff] %v610_v13  ;;  %658 = vst [vmem:[#allocation2 + $0x88] sm:$0xff] %v626_v14  ;;  %v520_v18 = vpop.f32.mrb[2].mxu0  ;;  %v568_v19 = vpop.f32.mrb[2].mxu1  ;;  %v381_v13 = vld [vmem:[#allocation2 + $0x68] sm:$0xff] }
 0x19f   : > { %v611_v20 = vadd.f32 %v520_v18, %v370_v15  ;;  %v627_v21 = vadd.f32 %v568_v19, %v386_v16  ;;  %v522_v22 = vpop.f32.mrb[3].mxu0  ;;  %v570_v23 = vpop.f32.mrb[3].mxu1  ;;  %v397_v14 = vld [vmem:[#allocation2 + $0xe8] sm:$0xff] }
 0x1a0   : > { %v612_v24 = vadd.f32 %v522_v22, %v371_v8  ;;  %v628_v25 = vadd.f32 %v570_v23, %v387_v17  ;;  %v382_v22 = vld [vmem:[#allocation2 + $0x70] sm:$0xff] }
 0x1a1   : > { %643 = vst [vmem:[#allocation2 + $0x10] sm:$0xff] %v611_v20  ;;  %659 = vst [vmem:[#allocation2 + $0x90] sm:$0xff] %v627_v21  ;;  %v398_v23 = vld [vmem:[#allocation2 + $0xf0] sm:$0xff] }
 0x1a2   : > { %644 = vst [vmem:[#allocation2 + $0x18] sm:$0xff] %v612_v24  ;;  %660 = vst [vmem:[#allocation2 + $0x98] sm:$0xff] %v628_v25  ;;  %v526_v30 = vpop.f32.mrb[4].mxu0  ;;  %v574_v31 = vpop.f32.mrb[4].mxu1  ;;  %v383_v24 = vld [vmem:[#allocation2 + $0x78] sm:$0xff] }
 0x1a3   : > { %v613_v32 = vadd.f32 %v526_v30, %v372_v26  ;;  %v629_v33 = vadd.f32 %v574_v31, %v388_v27  ;;  %v528_v34 = vpop.f32.mrb[5].mxu0  ;;  %v576_v35 = vpop.f32.mrb[5].mxu1  ;;  %v399_v25 = vld [vmem:[#allocation2 + $0xf8] sm:$0xff] }
 0x1a4   : > { %v614_v36 = vadd.f32 %v528_v34, %v373_v28  ;;  %v630_v37 = vadd.f32 %v576_v35, %v389_v29  ;;  %v711_v34 = vld [vmem:[%s1886_s13 + $0x10] sm:$0xff] (!%p1093_p3)  ;;  %v709_v35 = vld [vmem:[%s1886_s13] sm:$0xff] (!%p1093_p3) }
 0x1a5   : > { %645 = vst [vmem:[#allocation2 + $0x20] sm:$0xff] %v613_v32  ;;  %661 = vst [vmem:[#allocation2 + $0xa0] sm:$0xff] %v629_v33 }
 0x1a6   : > { %646 = vst [vmem:[#allocation2 + $0x28] sm:$0xff] %v614_v36  ;;  %662 = vst [vmem:[#allocation2 + $0xa8] sm:$0xff] %v630_v37  ;;  %v532_v42 = vpop.f32.mrb[6].mxu0  ;;  %v580_v43 = vpop.f32.mrb[6].mxu1  ;;  %v1549_v36 = vmov (!%p1093_p3), 0   ;;  %v712_v37 = vld [vmem:[%s1886_s13 + $0x18] sm:$0xff] (!%p1093_p3) }
 0x1a7   : > { %v615_v44 = vadd.f32 %v532_v42, %v374_v38  ;;  %v631_v45 = vadd.f32 %v580_v43, %v390_v39  ;;  %v534_v46 = vpop.f32.mrb[7].mxu0  ;;  %v582_v47 = vpop.f32.mrb[7].mxu1  ;;  %1311 = vset.pattern.permute.xlu1 (!%p1093_p3), %v1549_v36  ;;  %1310 = vset.pattern.permute.xlu0 (!%p1093_p3), %v1549_v36  ;;  %v710_v38 = vld [vmem:[%s1886_s13 + $0x8] sm:$0xff] (!%p1093_p3)  ;;  %v715_v42 = vld [vmem:[%s1886_s13 + $0x30] sm:$0xff] (!%p1093_p3) }
 0x1a8   : > { %v616_v48 = vadd.f32 %v534_v46, %v375_v40  ;;  %v632_v49 = vadd.f32 %v582_v47, %v391_v41  ;;  %737 = vperm.xlu1 (!%p1093_p3), %1311, %v711_v34   ;;  %727 = vperm.xlu0 (!%p1093_p3), %1310, %v709_v35   ;;  %v714_v39 = vld [vmem:[%s1886_s13 + $0x28] sm:$0xff] (!%p1093_p3)  ;;  %v713_v40 = vld [vmem:[%s1886_s13 + $0x20] sm:$0xff] (!%p1093_p3)  ;;  %v716_v41 = vld [vmem:[%s1886_s13 + $0x38] sm:$0xff] (!%p1093_p3) }
 0x1a9   : > { %647 = vst [vmem:[#allocation2 + $0x30] sm:$0xff] %v615_v44  ;;  %663 = vst [vmem:[#allocation2 + $0xb0] sm:$0xff] %v631_v45  ;;  %v718_v43 = vld [vmem:[%s1886_s13 + $0x48] sm:$0xff] (!%p1093_p3)  ;;  %v717_v44 = vld [vmem:[%s1886_s13 + $0x40] sm:$0xff] (!%p1093_p3) }
 0x1aa   : > { %648 = vst [vmem:[#allocation2 + $0x38] sm:$0xff] %v616_v48  ;;  %664 = vst [vmem:[#allocation2 + $0xb8] sm:$0xff] %v632_v49  ;;  %v538_v54 = vpop.f32.mrb[8].mxu0  ;;  %v586_v55 = vpop.f32.mrb[8].mxu1  ;;  %v720_v45 = vld [vmem:[%s1886_s13 + $0x58] sm:$0xff] (!%p1093_p3)  ;;  %v719_v46 = vld [vmem:[%s1886_s13 + $0x50] sm:$0xff] (!%p1093_p3) }
 0x1ab   : > { %v617_v56 = vadd.f32 %v538_v54, %v376_v50  ;;  %v633_v57 = vadd.f32 %v586_v55, %v392_v51  ;;  %v540_v58 = vpop.f32.mrb[9].mxu0  ;;  %v588_v59 = vpop.f32.mrb[9].mxu1  ;;  %v722_v47 = vld [vmem:[%s1886_s13 + $0x68] sm:$0xff] (!%p1093_p3)  ;;  %v721_v48 = vld [vmem:[%s1886_s13 + $0x60] sm:$0xff] (!%p1093_p3)  ;;  %v724_v49 = vld [vmem:[%s1886_s13 + $0x78] sm:$0xff] (!%p1093_p3)  ;;  %v839_v51 = vlaneseq (!%p1093_p3) }
 0x1ac   : > { %v618_v60 = vadd.f32 %v540_v58, %v377_v52  ;;  %v634_v61 = vadd.f32 %v588_v59, %v393_v53  ;;  %742 = vperm.xlu1 (!%p1093_p3), %1311, %v712_v37   ;;  %732 = vperm.xlu0 (!%p1093_p3), %1310, %v710_v38   ;;  %v723_v50 = vld [vmem:[%s1886_s13 + $0x70] sm:$0xff] (!%p1093_p3)  ;;  %v837_v55 = vld [vmem:[%s328_s25] sm:$0x3] (!%p1093_p3)  ;;  %v678_v59 = vld [vmem:[#allocation2 + $0x8] sm:$0xff] (!%p1093_p3) }
 0x1ad   : > { %649 = vst [vmem:[#allocation2 + $0x40] sm:$0xff] %v617_v56  ;;  %665 = vst [vmem:[#allocation2 + $0xc0] sm:$0xff] %v633_v57  ;;  %v840_v52 = vshrl.u32 (!%p1093_p3), %v839_v51, 7  ;;  %v681_v56 = vld [vmem:[#allocation2 + $0x20] sm:$0xff] (!%p1093_p3)  ;;  %v682_v57 = vld [vmem:[#allocation2 + $0x28] sm:$0xff] (!%p1093_p3) }
 0x1ae   : > { %650 = vst [vmem:[#allocation2 + $0x48] sm:$0xff] %v618_v60  ;;  %666 = vst [vmem:[#allocation2 + $0xc8] sm:$0xff] %v634_v61  ;;  %v544_v2 = vpop.f32.mrb[10].mxu0  ;;  %v592_v3 = vpop.f32.mrb[10].mxu1  ;;  %v677_v58 = vld [vmem:[#allocation2] sm:$0xff] (!%p1093_p3) }
 0x1af   : > { %v619_v4 = vadd.f32 %v544_v2, %v378_v62  ;;  %v635_v5 = vadd.f32 %v592_v3, %v394_v63  ;;  %v546_v6 = vpop.f32.mrb[11].mxu0  ;;  %v594_v7 = vpop.f32.mrb[11].mxu1  ;;  %v841_v53 = vsub.s32 (!%p1093_p3), 0, %v840_v52  ;;  %v845_v54 = vsub.s32 (!%p1093_p3), 1, %v840_v52 }
 0x1b0   : > { %v620_v9 = vadd.f32 %v546_v6, %v379_v0  ;;  %v636_v10 = vadd.f32 %v594_v7, %v395_v1  ;;  %752 = vperm.xlu1 (!%p1093_p3), %1311, %v714_v39   ;;  %747 = vperm.xlu0 (!%p1093_p3), %1310, %v713_v40   ;;  %v679_v6 = vld [vmem:[#allocation2 + $0x10] sm:$0xff] (!%p1093_p3)  ;;  %v680_v7 = vld [vmem:[#allocation2 + $0x18] sm:$0xff] (!%p1093_p3) }
 0x1b1   : > { %651 = vst [vmem:[#allocation2 + $0x50] sm:$0xff] %v619_v4  ;;  %667 = vst [vmem:[#allocation2 + $0xd0] sm:$0xff] %v635_v5  ;;  %v1984_v60 = vrot.slane (!%p1093_p3), %v837_v55, %v841_v53  ;;  %v1986_v61 = vrot.slane (!%p1093_p3), %v837_v55, %v845_v54  ;;  %v683_v4 = vld [vmem:[#allocation2 + $0x30] sm:$0xff] (!%p1093_p3)  ;;  %v684_v5 = vld [vmem:[#allocation2 + $0x38] sm:$0xff] (!%p1093_p3) }
 0x1b2   : > { %652 = vst [vmem:[#allocation2 + $0x58] sm:$0xff] %v620_v9  ;;  %668 = vst [vmem:[#allocation2 + $0xd8] sm:$0xff] %v636_v10  ;;  %v550_v15 = vpop.f32.mrb[12].mxu0  ;;  %v598_v16 = vpop.f32.mrb[12].mxu1 }
 0x1b3   : > { %v621_v8 = vadd.f32 %v550_v15, %v380_v11  ;;  %v637_v17 = vadd.f32 %v598_v16, %v396_v12  ;;  %v552_v18 = vpop.f32.mrb[13].mxu0  ;;  %v600_v19 = vpop.f32.mrb[13].mxu1 }
 0x1b4   : > { %v622_v20 = vadd.f32 %v552_v18, %v381_v13  ;;  %v638_v21 = vadd.f32 %v600_v19, %v397_v14  ;;  %676 = sbr.rel (%p1093_p3) target bundleno = 586 (0x24a), region = 52  ;;  %762 = vperm.xlu1 (!%p1093_p3), %1311, %v716_v41   ;;  %757 = vperm.xlu0 (!%p1093_p3), %1310, %v715_v42  }
 0x1b5   : > { %653 = vst [vmem:[#allocation2 + $0x60] sm:$0xff] %v621_v8  ;;  %669 = vst [vmem:[#allocation2 + $0xe0] sm:$0xff] %v637_v17 }
 0x1b6   : > { %654 = vst [vmem:[#allocation2 + $0x68] sm:$0xff] %v622_v20  ;;  %670 = vst [vmem:[#allocation2 + $0xe8] sm:$0xff] %v638_v21  ;;  %v556_v26 = vpop.f32.mrb[14].mxu0  ;;  %v604_v27 = vpop.f32.mrb[14].mxu1  ;;  %v685_v20 = vld [vmem:[#allocation2 + $0x40] sm:$0xff] (!%p1093_p3)  ;;  %v686_v21 = vld [vmem:[#allocation2 + $0x48] sm:$0xff] (!%p1093_p3) }
 0x1b7   : > { %v623_v28 = vadd.f32 %v556_v26, %v382_v22  ;;  %v639_v29 = vadd.f32 %v604_v27, %v398_v23  ;;  %v558_v30 = vpop.f32.mrb[15].mxu0  ;;  %v606_v31 = vpop.f32.mrb[15].mxu1 }
 0x1b8   : > { %v624_v32 = vadd.f32 %v558_v30, %v383_v24  ;;  %v640_v33 = vadd.f32 %v606_v31, %v399_v25  ;;  %772 = vperm.xlu1 (!%p1093_p3), %1311, %v718_v43   ;;  %767 = vperm.xlu0 (!%p1093_p3), %1310, %v717_v44   ;;  %v687_v18 = vld [vmem:[#allocation2 + $0x50] sm:$0xff] (!%p1093_p3) }
 0x1b9   : > { %655 = vst [vmem:[#allocation2 + $0x70] sm:$0xff] %v623_v28  ;;  %671 = vst [vmem:[#allocation2 + $0xf0] sm:$0xff] %v639_v29  ;;  %v688_v19 = vld [vmem:[#allocation2 + $0x58] sm:$0xff] (!%p1093_p3) }
 0x1ba   : > { %656 = vst [vmem:[#allocation2 + $0x78] sm:$0xff] %v624_v32  ;;  %672 = vst [vmem:[#allocation2 + $0xf8] sm:$0xff] %v640_v33 }
 0x1bc   : > { %782 = vperm.xlu1 %1311, %v720_v45   ;;  %777 = vperm.xlu0 %1310, %v719_v46   ;;  %v689_v34 = vld [vmem:[#allocation2 + $0x60] sm:$0xff]  ;;  %v695_v46 = vld [vmem:[#allocation2 + $0x90] sm:$0xff] }
 0x1bd   : > { %v690_v35 = vld [vmem:[#allocation2 + $0x68] sm:$0xff] }
 0x1c0   : > { %792 = vperm.xlu1 %1311, %v722_v47   ;;  %787 = vperm.xlu0 %1310, %v721_v48   ;;  %v691_v32 = vld [vmem:[#allocation2 + $0x70] sm:$0xff]  ;;  %v696_v47 = vld [vmem:[#allocation2 + $0x98] sm:$0xff]  ;;  %v693_v48 = vld [vmem:[#allocation2 + $0x80] sm:$0xff] }
 0x1c1   : > { %v692_v33 = vld [vmem:[#allocation2 + $0x78] sm:$0xff] }
 0x1c4   : > { %802 = vperm.xlu1 %1311, %v724_v49   ;;  %797 = vperm.xlu0 %1310, %v723_v50   ;;  %v694_v49 = vld [vmem:[#allocation2 + $0x88] sm:$0xff] }
 0x227   : > { %v738_v62 = vpop.permute.xlu1 %737  ;;  %v728_v63 = vpop.permute.xlu0 %727 }
 0x228   : > { %v809_v0 = vmul.f32 %v738_v62, %v681_v56  ;;  %v810_v1 = vmul.f32 %v738_v62, %v682_v57  ;;  %v805_v2 = vmul.f32 %v728_v63, %v677_v58  ;;  %v806_v3 = vmul.f32 %v728_v63, %v678_v59  ;;  %v699_v62 = vld [vmem:[#allocation2 + $0xb0] sm:$0xff]  ;;  %v700_v63 = vld [vmem:[#allocation2 + $0xb8] sm:$0xff] }
 0x22a   : > { %v853_v9 = vmul.f32 %v1984_v60, %v809_v0  ;;  %v854_v10 = vmul.f32 %v1986_v61, %v810_v1  ;;  %v849_v11 = vmul.f32 %v1984_v60, %v805_v2  ;;  %v850_v12 = vmul.f32 %v1986_v61, %v806_v3  ;;  %v697_v0 = vld [vmem:[#allocation2 + $0xa0] sm:$0xff]  ;;  %v698_v1 = vld [vmem:[#allocation2 + $0xa8] sm:$0xff] }
 0x22b   : > { %v743_v13 = vpop.permute.xlu1 %742  ;;  %v733_v14 = vpop.permute.xlu0 %732 }
 0x22c   : > { %885 = vst [vmem:[%s1895_s1 + $0x20] sm:$0xff] %v853_v9  ;;  %886 = vst [vmem:[%s1895_s1 + $0x28] sm:$0xff] %v854_v10  ;;  %v811_v15 = vmul.f32 %v743_v13, %v683_v4  ;;  %v812_v16 = vmul.f32 %v743_v13, %v684_v5  ;;  %v807_v8 = vmul.f32 %v733_v14, %v679_v6  ;;  %v703_v13 = vld [vmem:[#allocation2 + $0xd0] sm:$0xff] }
 0x22d   : > { %881 = vst [vmem:[%s1895_s1] sm:$0xff] %v849_v11  ;;  %882 = vst [vmem:[%s1895_s1 + $0x8] sm:$0xff] %v850_v12  ;;  %v808_v17 = vmul.f32 %v733_v14, %v680_v7  ;;  %v704_v14 = vld [vmem:[#allocation2 + $0xd8] sm:$0xff] }
 0x22e   : > { %v855_v22 = vmul.f32 %v1984_v60, %v811_v15  ;;  %v856_v23 = vmul.f32 %v1986_v61, %v812_v16  ;;  %v851_v24 = vmul.f32 %v1984_v60, %v807_v8  ;;  %v701_v15 = vld [vmem:[#allocation2 + $0xc0] sm:$0xff]  ;;  %v702_v16 = vld [vmem:[#allocation2 + $0xc8] sm:$0xff] }
 0x22f   : > { %v852_v25 = vmul.f32 %v1986_v61, %v808_v17  ;;  %v753_v26 = vpop.permute.xlu1 %752  ;;  %v748_v27 = vpop.permute.xlu0 %747 }
 0x230   : > { %887 = vst [vmem:[%s1895_s1 + $0x30] sm:$0xff] %v855_v22  ;;  %888 = vst [vmem:[%s1895_s1 + $0x38] sm:$0xff] %v856_v23  ;;  %v815_v28 = vmul.f32 %v753_v26, %v687_v18  ;;  %v816_v29 = vmul.f32 %v753_v26, %v688_v19  ;;  %v813_v30 = vmul.f32 %v748_v27, %v685_v20  ;;  %v707_v26 = vld [vmem:[#allocation2 + $0xf0] sm:$0xff] }
 0x231   : > { %883 = vst [vmem:[%s1895_s1 + $0x10] sm:$0xff] %v851_v24  ;;  %884 = vst [vmem:[%s1895_s1 + $0x18] sm:$0xff] %v852_v25  ;;  %v814_v31 = vmul.f32 %v748_v27, %v686_v21  ;;  %v708_v27 = vld [vmem:[#allocation2 + $0xf8] sm:$0xff] }
 0x232   : > { %v859_v36 = vmul.f32 %v1984_v60, %v815_v28  ;;  %v860_v37 = vmul.f32 %v1986_v61, %v816_v29  ;;  %v857_v38 = vmul.f32 %v1984_v60, %v813_v30  ;;  %v705_v28 = vld [vmem:[#allocation2 + $0xe0] sm:$0xff]  ;;  %v706_v29 = vld [vmem:[#allocation2 + $0xe8] sm:$0xff] }
 0x233   : > { %v858_v39 = vmul.f32 %v1986_v61, %v814_v31  ;;  %v763_v40 = vpop.permute.xlu1 %762  ;;  %v758_v41 = vpop.permute.xlu0 %757 }
 0x234   : > { %891 = vst [vmem:[%s1895_s1 + $0x50] sm:$0xff] %v859_v36  ;;  %892 = vst [vmem:[%s1895_s1 + $0x58] sm:$0xff] %v860_v37  ;;  %v819_v42 = vmul.f32 %v763_v40, %v691_v32  ;;  %v820_v43 = vmul.f32 %v763_v40, %v692_v33  ;;  %v817_v44 = vmul.f32 %v758_v41, %v689_v34 }
 0x235   : > { %889 = vst [vmem:[%s1895_s1 + $0x40] sm:$0xff] %v857_v38  ;;  %890 = vst [vmem:[%s1895_s1 + $0x48] sm:$0xff] %v858_v39  ;;  %v818_v45 = vmul.f32 %v758_v41, %v690_v35 }
 0x236   : > { %v863_v50 = vmul.f32 %v1984_v60, %v819_v42  ;;  %v864_v51 = vmul.f32 %v1986_v61, %v820_v43  ;;  %v861_v52 = vmul.f32 %v1984_v60, %v817_v44 }
 0x237   : > { %v862_v53 = vmul.f32 %v1986_v61, %v818_v45  ;;  %v773_v54 = vpop.permute.xlu1 %772  ;;  %v768_v55 = vpop.permute.xlu0 %767 }
 0x238   : > { %895 = vst [vmem:[%s1895_s1 + $0x70] sm:$0xff] %v863_v50  ;;  %896 = vst [vmem:[%s1895_s1 + $0x78] sm:$0xff] %v864_v51  ;;  %v823_v56 = vmul.f32 %v773_v54, %v695_v46  ;;  %v824_v57 = vmul.f32 %v773_v54, %v696_v47  ;;  %v821_v58 = vmul.f32 %v768_v55, %v693_v48 }
 0x239   : > { %893 = vst [vmem:[%s1895_s1 + $0x60] sm:$0xff] %v861_v52  ;;  %894 = vst [vmem:[%s1895_s1 + $0x68] sm:$0xff] %v862_v53  ;;  %v822_v59 = vmul.f32 %v768_v55, %v694_v49 }
 0x23a   : > { %v867_v2 = vmul.f32 %v1984_v60, %v823_v56  ;;  %v868_v3 = vmul.f32 %v1986_v61, %v824_v57  ;;  %v865_v4 = vmul.f32 %v1984_v60, %v821_v58 }
 0x23b   : > { %v866_v5 = vmul.f32 %v1986_v61, %v822_v59  ;;  %v783_v6 = vpop.permute.xlu1 %782  ;;  %v778_v7 = vpop.permute.xlu0 %777 }
 0x23c   : > { %899 = vst [vmem:[%s1895_s1 + $0x90] sm:$0xff] %v867_v2  ;;  %900 = vst [vmem:[%s1895_s1 + $0x98] sm:$0xff] %v868_v3  ;;  %v827_v9 = vmul.f32 %v783_v6, %v699_v62  ;;  %v828_v10 = vmul.f32 %v783_v6, %v700_v63  ;;  %v825_v11 = vmul.f32 %v778_v7, %v697_v0 }
 0x23d   : > { %897 = vst [vmem:[%s1895_s1 + $0x80] sm:$0xff] %v865_v4  ;;  %898 = vst [vmem:[%s1895_s1 + $0x88] sm:$0xff] %v866_v5  ;;  %v826_v12 = vmul.f32 %v778_v7, %v698_v1 }
 0x23e   : > { %v871_v8 = vmul.f32 %v1984_v60, %v827_v9  ;;  %v872_v17 = vmul.f32 %v1986_v61, %v828_v10  ;;  %v869_v18 = vmul.f32 %v1984_v60, %v825_v11 }
 0x23f   : > { %v870_v19 = vmul.f32 %v1986_v61, %v826_v12  ;;  %v793_v20 = vpop.permute.xlu1 %792  ;;  %v788_v21 = vpop.permute.xlu0 %787 }
 0x240   : > { %903 = vst [vmem:[%s1895_s1 + $0xb0] sm:$0xff] %v871_v8  ;;  %904 = vst [vmem:[%s1895_s1 + $0xb8] sm:$0xff] %v872_v17  ;;  %v831_v22 = vmul.f32 %v793_v20, %v703_v13  ;;  %v832_v23 = vmul.f32 %v793_v20, %v704_v14  ;;  %v829_v24 = vmul.f32 %v788_v21, %v701_v15 }
 0x241   : > { %901 = vst [vmem:[%s1895_s1 + $0xa0] sm:$0xff] %v869_v18  ;;  %902 = vst [vmem:[%s1895_s1 + $0xa8] sm:$0xff] %v870_v19  ;;  %v830_v25 = vmul.f32 %v788_v21, %v702_v16 }
 0x242   : > { %v875_v30 = vmul.f32 %v1984_v60, %v831_v22  ;;  %v876_v31 = vmul.f32 %v1986_v61, %v832_v23  ;;  %v873_v32 = vmul.f32 %v1984_v60, %v829_v24 }
 0x243   : > { %v874_v33 = vmul.f32 %v1986_v61, %v830_v25  ;;  %v803_v34 = vpop.permute.xlu1 %802  ;;  %v798_v35 = vpop.permute.xlu0 %797 }
 0x244   : > { %907 = vst [vmem:[%s1895_s1 + $0xd0] sm:$0xff] %v875_v30  ;;  %908 = vst [vmem:[%s1895_s1 + $0xd8] sm:$0xff] %v876_v31  ;;  %v835_v36 = vmul.f32 %v803_v34, %v707_v26  ;;  %v836_v37 = vmul.f32 %v803_v34, %v708_v27  ;;  %v833_v38 = vmul.f32 %v798_v35, %v705_v28 }
 0x245   : > { %905 = vst [vmem:[%s1895_s1 + $0xc0] sm:$0xff] %v873_v32  ;;  %906 = vst [vmem:[%s1895_s1 + $0xc8] sm:$0xff] %v874_v33  ;;  %v834_v39 = vmul.f32 %v798_v35, %v706_v29 }
 0x246   : > { %v879_v40 = vmul.f32 %v1984_v60, %v835_v36  ;;  %v880_v41 = vmul.f32 %v1986_v61, %v836_v37  ;;  %v877_v42 = vmul.f32 %v1984_v60, %v833_v38 }
 0x247   : > { %v878_v43 = vmul.f32 %v1986_v61, %v834_v39 }
 0x248   : > { %911 = vst [vmem:[%s1895_s1 + $0xf0] sm:$0xff] %v879_v40  ;;  %912 = vst [vmem:[%s1895_s1 + $0xf8] sm:$0xff] %v880_v41 }
 0x249   : > { %909 = vst [vmem:[%s1895_s1 + $0xe0] sm:$0xff] %v877_v42  ;;  %910 = vst [vmem:[%s1895_s1 + $0xe8] sm:$0xff] %v878_v43 }
 0x24a PF: > { %s2209_s25 = sld [smem:[#allocation14_spill]]  ;;  %s2210_s10 = sld [smem:[#allocation18_spill]] }
 0x24b   : > { %s930_s26 = sshll.u32 %s1895_s1, 4  ;;  %s2211_s8 = sld [smem:[#allocation24_spill]]  ;;  %s2055_s26 = int_to_ptr.vmem [resolvable:$true] %s930_s26 }
 0x24c   : > { %s2212_s29 = sand.u32 1, %s1482_s16   ;;  %s1372_s4 = scalar_lea.vmem %s2055_s26, 4096 }
 0x24d   : > { %s2064_s6 = scalar_lea.sflag [#allocation5], %s2212_s29  ;;  %p1373_p4 = scmp.ne.s32.totalorder %s2055_s26, %s1372_s4 }
 0x24e   : > { %s1550_s1 = smov [#allocation8]  }
 0x250   : > { %s1103_s18 = sshll.u32 %s2209_s25, 6  ;;  %p2213_p11 = scmp.ne.s32.totalorder %s2210_s10, 0 }
 0x251   : > { %s927_s9 = sadd.s32 %s1103_s18, %s1880_s2  ;;  %s1376_s2 = sshll.u32 %s1550_s1, 4  ;;  %s1377_s2 = int_to_ptr.vmem [resolvable:$false] %s1376_s2 }
 0x252   : > { %s1098_s13 = sshll.u32 %s927_s9, 7  ;;  %p1374_p10 = pnand %p1373_p4, %p2213_p11 }
 0x253   : > { %s2060_s12 = scalar_lea.hbm %s2211_s8, %s1098_s13  ;;  %s1378_s7 = scalar_lea.vmem %s1377_s2, 8192 }
 0x254   : > { %p1375_p1 = pneg %p1374_p10  ;;  %p1379_p8 = scmp.lt.s32.totalorder %s2055_s26, %s1377_s2 }
 0x255   : > { %p1380_p5 = scmp.lt.s32.totalorder %s1378_s7, %s1372_s4 }
 0x257   : > { %p1381_p7 = por %p1380_p5, %p1379_p8 }
 0x259   : > { %p1382_p9 = pnand %p1381_p7, %p1375_p1 }
 0x25b   : > { %1385 = shalt.err (!%p1382_p9)
}
 0x25c   : > { %s1386_s14 = scalar_lea.hbm %s2060_s12, 4096  ;;  %s1390_s9 = scalar_lea.hbm %s2211_s8, 16384 }
 0x25d   : > { %p1387_p12 = scmp.ne.s32.totalorder %s2060_s12, %s1386_s14  ;;  %p1391_p13 = scmp.lt.u32.totalorder %s2060_s12, %s2211_s8 }
 0x25e   : > { %p1392_p0 = scmp.lt.u32.totalorder %s1390_s9, %s1386_s14  ;;  %p1394_p4 = scmp.lt.u32.totalorder %s1386_s14, %s2060_s12 }
 0x25f   : > { %p1388_p6 = pnand %p1387_p12, %p2213_p11 }
 0x260   : > { %p1393_p3 = por %p1392_p0, %p1391_p13 }
 0x261   : > { %p1389_p2 = pneg %p1388_p6 }
 0x262   : > { %p1395_p10 = por %p1394_p4, %p1393_p3 }
 0x264   : > { %p1396_p1 = pnand %p1395_p10, %p1389_p2 }
 0x266   : > { %1399 = shalt.err (!%p1396_p1)
}
 0x267   : > { %s1551_s21 = smov 256   ;;  %s1552_s29 = smov 512  }
 0x268   : > { %s1553_s4 = smov 16  }
 0x269   : > { %1156 = dma.vmem_to_hbm [thread:$0]  (%p2213_p11), %s2055_s26, 4096, %s2060_s12, %s2064_s6, %s1551_s21, %s1552_s29, %s1553_s4  }
 0x26a PF: > { %p1170_p8 = scmp.ge.s32.totalorder %s1538_s30, 2  ;;  %s945_s1 = sand.u32 1, %s1478_s15  }
 0x26b   : > { %p2214_p5 = scmp.ne.s32.totalorder %s2195_s11, 0  ;;  %s946_s2 = scalar_lea.sflag [#allocation5], %s945_s1 }
 0x26d   : > { %p1166_p7 = pnand %p1170_p8, %p2214_p5 }
 0x26f   : > { %1473 = dma.done.wait (!%p1166_p7), %s946_s2, 4096  }
 0x270   : > { %1475 = vsyncadd (!%p1166_p7), %s946_s2, 4294963200  ;;  %s23_s30 = sadd.s32 1, %s1538_s30   ;;  %s2216_s26 = sld [smem:[#allocation15_spill]] }
 0x271   : > { %p2093_p9 = scmp.ge.s32.totalorder %s23_s30, 10   ;;  %s2217_s11 = sld [smem:[#allocation16_spill]] }
 0x272   : > { %s2218_s10 = sld [smem:[#allocation17_spill]]  ;;  %s2219_s29 = sld [smem:[#allocation19_spill]] }
 0x273   : > { %s2220_s15 = smov %s1482_s16  ;;  %s2221_s16 = smov %s1486_s17 }
 0x274   : > { %s2222_s17 = smov %s1807_s5  ;;  %s2223_s18 = smov %s1494_s19 }
 0x275   : > { %s2224_s19 = smov %s1498_s20  ;;  %s2225_s20 = smov %s1793_s3 }
 0x276   : > { %s2226_s21 = smov %s1506_s22  ;;  %s2227_s22 = smov %s1510_s23 }
 0x277   : > { %s2228_s23 = smov %s1804_s0  ;;  %s2229_s24 = smov %s1526_s27 }
 0x278   : > { %s2230_s25 = smov %s1530_s28  ;;  %s2231_s27 = smov %s2217_s11 }
 0x279   : > { %s2232_s28 = smov %s2218_s10  ;;  %22 = sbr.rel (!%p2093_p9) target bundleno = 19 (0x13), region = 108 }
 0x280   :  { %951 = vsyncpa [#allocation4], 1 }
 0x281   :  { %953 = vsyncpa [#allocation4 + $0x1], 1 }
 0x282   :  { %954 = vsyncpa [#allocation7], 1 }
 0x283   :  { %956 = vsyncpa [#allocation7 + $0x1], 1 }
 0x284   :  { %957 = vsyncpa [#allocation5], 1 }
 0x285   :  { %959 = vsyncpa [#allocation5 + $0x1], 1 }

</bundles_post_ra>
